<compile_context>
chip_gen: v7x
topology: tpu7x:2x2x1
jax: 0.10.0
libtpu: 0.0.40
codegen_flags: <defaults>
</compile_context>

<pallas_src>
import math

import jax
import jax.numpy as jnp
from jax.experimental import pallas as pl
from jax.experimental.pallas import tpu as pltpu

_LANE = 128
_TARGET_BLOCK_BYTES = 4 * 1024 * 1024       # ~4 MiB per block (v7x-friendly)
_VMEM_LIMIT_BYTES = 32 * 1024 * 1024        # safe on v5e/v6e (128 MiB) and v7x (64 MiB)
_MIN_KERNEL_BYTES = 256 * 1024              # below this, plain XLA add is faster


def _pe_add_kernel(x_ref, pe_ref, o_ref):
    # x_ref / pe_ref / o_ref: [TILE_ROWS, LANES]  (batch dim squeezed away)
    o_ref[...] = x_ref[...] + pe_ref[...]


def _round_up(x: int, m: int) -> int:
    return ((x + m - 1) // m) * m


def make_positional_encoding_table(d_model: int, max_len: int = 5000,
                                   dtype=jnp.float32) -> jnp.ndarray:
    """Deterministic buffer identical to the PyTorch __init__ (pe squeezed to [max_len, d_model]).

    Build it once in the activation dtype so the forward pass never has to
    re-cast / re-materialize the table.
    """
    assert d_model % 2 == 0, "d_model must be even (same limitation as the PyTorch recipe)"
    position = jnp.arange(max_len, dtype=jnp.float32)[:, None]              # [max_len, 1]
    div_term = jnp.exp(jnp.arange(0, d_model, 2, dtype=jnp.float32)
                       * (-math.log(10000.0) / d_model))                    # [d_model//2]
    pe = jnp.zeros((max_len, d_model), dtype=jnp.float32)
    pe = pe.at[:, 0::2].set(jnp.sin(position * div_term))
    pe = pe.at[:, 1::2].set(jnp.cos(position * div_term))
    return pe.astype(dtype)


def _launch_lane_dense(x_flat: jnp.ndarray, pe_flat: jnp.ndarray, rows: int) -> jnp.ndarray:
    """x_flat: [B, rows, 128]; pe_flat: [>=rows, 128]. Returns [B, rows, 128]."""
    B = x_flat.shape[0]
    dtype = x_flat.dtype
    esize = jnp.dtype(dtype).itemsize
    granule = {4: 8, 2: 16, 1: 32}.get(esize, 8)  # sublane granularity per dtype

    if rows <= granule:
        # Full-extent blocks (exempt from the (8,128) divisibility rule).
        tr = rows
        n_s = 1
    else:
        target_rows = max(granule,
                          (_TARGET_BLOCK_BYTES // (_LANE * esize) // granule) * granule)
        # Aim for >= 2 s-tiles so the 'parallel' axis can be split across
        # TensorCores on megacore parts (v7x); ragged last block is fine.
        half = _round_up(pl.cdiv(rows, 2), granule)
        tr = max(granule, min(target_rows, half))
        n_s = pl.cdiv(rows, tr)

    if tr % granule != 0:
        # Full-dims exemption requires the pe block to equal the full pe array.
        pe_flat = pe_flat[:rows]

    cost = pl.CostEstimate(
        flops=B * rows * _LANE,
        transcendentals=0,
        bytes_accessed=(2 * B + 1) * rows * _LANE * esize,
    )

    return pl.pallas_call(
        _pe_add_kernel,
        out_shape=jax.ShapeDtypeStruct((B, rows, _LANE), dtype),
        grid_spec=pltpu.PrefetchScalarGridSpec(
            num_scalar_prefetch=0,
            grid=(n_s, B),  # batch innermost -> pe tile fetched once per s-tile
            in_specs=[
                pl.BlockSpec((pl.Squeezed(), tr, _LANE), lambda s, b: (b, s, 0)),
                pl.BlockSpec((tr, _LANE), lambda s, b: (s, 0)),
            ],
            out_specs=pl.BlockSpec((pl.Squeezed(), tr, _LANE),
                                   lambda s, b: (b, s, 0)),
        ),
        compiler_params=pltpu.CompilerParams(
            dimension_semantics=("parallel", "arbitrary"),
            vmem_limit_bytes=_VMEM_LIMIT_BYTES),
        cost_estimate=cost,
    )(x_flat, pe_flat)


def positional_encoding_forward(x: jnp.ndarray, pe: jnp.ndarray,
                                *, min_kernel_bytes: int = _MIN_KERNEL_BYTES) -> jnp.ndarray:
    """x: [batch, seq, d_model], pe: [max_len, d_model] -> [batch, seq, d_model]."""
    assert x.ndim == 3
    B, S, D = x.shape
    max_len = pe.shape[0]
    assert pe.shape == (max_len, D)
    assert S <= max_len

    if pe.dtype != x.dtype:
        # Prefer building the table in the activation dtype at init; this cast
        # is only a fallback so the kernel stays a same-dtype add.
        pe = pe.astype(x.dtype)

    esize = jnp.dtype(x.dtype).itemsize

    # Small-shape escape hatch: kernel launch + grid overhead exceeds the work.
    if B * S * D * esize < min_kernel_bytes:
        return x + pe[:S][None, :, :]

    F = S * D
    if F % _LANE == 0:
        # ---- Lane-dense path: flatten [S, D] -> rows of 128 lanes ----------
        rows = F // _LANE
        x_flat = x.reshape(B, rows, _LANE)
        if (max_len * D) % _LANE == 0:
            # Contiguous reshape of the full table (bitcast, no per-call copy);
            # the index_map only touches the first ~rows of it.
            pe_flat = pe.reshape(max_len * D // _LANE, _LANE)
        else:
            pe_flat = pe[:S].reshape(rows, _LANE)
        out = _launch_lane_dense(x_flat, pe_flat, rows)
        return out.reshape(B, S, D)

    # ---- Rare path: S*D not a multiple of 128 --------------------------
    # Zero-pad the flattened axis so stores stay lane-dense (avoids masked
    # vst.msk partial stores); the pad/slice are cheap wrapper-side XLA ops.
    rows = pl.cdiv(F, _LANE)
    Fp = rows * _LANE
    x_flat = jnp.pad(x.reshape(B, F), ((0, 0), (0, Fp - F))).reshape(B, rows, _LANE)
    pe_flat = jnp.pad(pe[:S].reshape(F), (0, Fp - F)).reshape(rows, _LANE)
    out = _launch_lane_dense(x_flat, pe_flat, rows)
    # TODO(synk): training-mode Dropout(p=0.1) not applied (would use pltpu.prng_* in-kernel).
    return out.reshape(B, Fp)[:, :F].reshape(B, S, D)


if __name__ == "__main__":
    key = jax.random.PRNGKey(0)

    # Case 1: tiny shape consistent with the module (escape-hatch path).
    B1, S1, D1 = 2, 8, 32
    x1 = jax.random.normal(key, (B1, S1, D1), dtype=jnp.float32)
    pe1 = make_positional_encoding_table(d_model=D1, max_len=5000, dtype=x1.dtype)
    y1 = jax.block_until_ready(positional_encoding_forward(x1, pe1))
    ref1 = x1 + pe1[:S1][None, :, :]
    assert y1.shape == x1.shape and jnp.allclose(y1, ref1, atol=1e-6), "mismatch (tiny path)"

    # Case 2: lane-dense kernel path with a ragged last s-tile (cdiv grid).
    B2, S2, D2 = 8, 100, 128
    x2 = jax.random.normal(jax.random.PRNGKey(1), (B2, S2, D2), dtype=jnp.float32)
    pe2 = make_positional_encoding_table(d_model=D2, max_len=5000, dtype=x2.dtype)
    y2 = jax.block_until_ready(positional_encoding_forward(x2, pe2))
    ref2 = x2 + pe2[:S2][None, :, :]
    assert y2.shape == x2.shape and jnp.allclose(y2, ref2, atol=1e-6), "mismatch (kernel path)"

    # Case 3: S*D not a multiple of 128 -> padded lane-dense kernel path
    # (force the kernel even at a small size to exercise it).
    B3, S3, D3 = 2, 10, 30
    x3 = jax.random.normal(jax.random.PRNGKey(2), (B3, S3, D3), dtype=jnp.float32)
    pe3 = make_positional_encoding_table(d_model=D3, max_len=5000, dtype=x3.dtype)
    y3 = jax.block_until_ready(positional_encoding_forward(x3, pe3, min_kernel_bytes=0))
    ref3 = x3 + pe3[:S3][None, :, :]
    assert y3.shape == x3.shape and jnp.allclose(y3, ref3, atol=1e-6), "mismatch (padded path)"

    print("KERNEL_OK")
</pallas_src>

<mosaic_0001>
module attributes {stable_mosaic.version = 11 : i64} {
  func.func @_pe_add_kernel(%arg0: i32, %arg1: i32, %arg2: memref<1x56x128xf32, #tpu.memory_space<vmem>>, %arg3: memref<56x128xf32, #tpu.memory_space<vmem>>, %arg4: memref<1x56x128xf32, #tpu.memory_space<vmem>>) attributes {dimension_semantics = [#tpu.dimension_semantics<parallel>, #tpu.dimension_semantics<arbitrary>], iteration_bounds = array<i64: 2, 8>, scalar_prefetch = 0 : i64, scratch_operands = 0 : i64, tpu.core_type = #tpu.core_type<tc>, window_params = [{transform_indices = @transform_0, window_bounds = array<i64: 1, 56, 128>}, {transform_indices = @transform_1, window_bounds = array<i64: 56, 128>}, {transform_indices = @transform_2, window_bounds = array<i64: 1, 56, 128>}]} {
    %c0 = arith.constant 0 : index
    %c0_0 = arith.constant 0 : index
    %c0_1 = arith.constant 0 : index
    %0 = vector.load %arg2[%c0, %c0_0, %c0_1] : memref<1x56x128xf32, #tpu.memory_space<vmem>>, vector<1x56x128xf32>
    %1 = vector.shape_cast %0 : vector<1x56x128xf32> to vector<56x128xf32>
    %c0_2 = arith.constant 0 : index
    %c0_3 = arith.constant 0 : index
    %2 = vector.load %arg3[%c0_2, %c0_3] : memref<56x128xf32, #tpu.memory_space<vmem>>, vector<56x128xf32>
    %3 = arith.addf %1, %2 : vector<56x128xf32>
    %c0_4 = arith.constant 0 : index
    %c0_5 = arith.constant 0 : index
    %c0_6 = arith.constant 0 : index
    %4 = vector.load %arg4[%c0_4, %c0_5, %c0_6] : memref<1x56x128xf32, #tpu.memory_space<vmem>>, vector<1x56x128xf32>
    %5 = vector.shape_cast %4 : vector<1x56x128xf32> to vector<56x128xf32>
    %6 = vector.shape_cast %3 : vector<56x128xf32> to vector<1x56x128xf32>
    tpu.vector_store %arg4[%c0_4, %c0_5, %c0_6], %6 {strides = array<i32>} : memref<1x56x128xf32, #tpu.memory_space<vmem>>, vector<1x56x128xf32>,
    return
  }
  func.func @transform_0(%arg0: i32, %arg1: i32) -> (i32, i32, i32) {
    %c0_i32 = arith.constant 0 : i32
    %c0_i32_0 = arith.constant 0 : i32
    return %arg1, %arg0, %c0_i32 : i32, i32, i32
  }
  func.func @transform_1(%arg0: i32, %arg1: i32) -> (i32, i32) {
    %c0_i32 = arith.constant 0 : i32
    %c0_i32_0 = arith.constant 0 : i32
    return %arg0, %c0_i32 : i32, i32
  }
  func.func @transform_2(%arg0: i32, %arg1: i32) -> (i32, i32, i32) {
    %c0_i32 = arith.constant 0 : i32
    %c0_i32_0 = arith.constant 0 : i32
    return %arg1, %arg0, %c0_i32 : i32, i32, i32
  }
}

</mosaic_0001>

<bundles_post_ra>
// kernel: tpu_custom_call.1
= control target key start
LH: loop header
LB: loop body
LE: loop exit
PB: predicated region body
PF: predicated region fallthrough
CT: control target
= control target key end

     0   :  { %7 = vsyncpa [#allocation3], 0  ;;  %s1149_s0 = inlined_call_operand.vmem [shape: f32[8,100,128], index: 0, kind: input, shape index: {}]   ;;  %s1150_s1 = inlined_call_operand.hbm [shape: f32[5000,128], index: 1, kind: input, shape index: {}]   ;;  %s1151_s2 = inlined_call_operand.vmem [shape: f32[8,100,128], index: 2, kind: output, shape index: {}]  }
   0x1   :  { %9 = vsyncpa [#allocation3 + $0x1], 0  ;;  %s935_s9 = smov 0   ;;  %s937_s10 = smov 0  }
   0x2   :  { %s939_s11 = smov 0   ;;  %s941_s12 = smov 0  }
   0x3   :  { %s943_s13 = smov 0   ;;  %s945_s14 = smov 0  }
   0x4   :  { %s947_s15 = smov 0   ;;  %s949_s16 = smov 0  }
   0x5   :  { %s951_s17 = smov 0   ;;  %s953_s18 = smov 0  }
   0x6 LB: > { %s558_s19 = sadd.s32 4294967295, %s883_s18   ;;  %s24_s20 = sadd.s32 1, %s875_s16  ;;  %s883_s18 = sphi %s953_s18, %s15_s18   ;;  %s879_s17 = sphi %s951_s17, %s1166_s17   ;;  %s875_s16 = sphi %s949_s16, %s1165_s16   ;;  %s871_s15 = sphi %s947_s15, %s1164_s15   ;;  %s867_s14 = sphi %s945_s14, %s1163_s14   ;;  %s863_s13 = sphi %s943_s13, %s1162_s13   ;;  %s859_s12 = sphi %s941_s12, %s1161_s12   ;;  %s855_s11 = sphi %s939_s11, %s1160_s11   ;;  %s851_s10 = sphi %s937_s10, %s1159_s10   ;;  %s847_s9 = sphi %s935_s9, %s1158_s9  }
   0x7   : > { %p25_p0 = scmp.ge.s32.totalorder %s24_s20, 8  ;;  %s27_s21 = sadd.s32 1, %s879_s17 }
   0x8   : > { %s62_s22 = sadd.s32 1, %s863_s13  ;;  %p69_p1 = scmp.ne.s32.totalorder %s863_s13, %s859_s12 }
   0x9   : > { %s1168_s20 = smov (%p25_p0, %s24_s20), 0  ;;  %s1170_s21 = smov (!%p25_p0, %s27_s21), %s879_s17 }
   0xa   : > { %p70_p2 = scmp.eq.s32.totalorder %s883_s18, 0  ;;  %p75_p3 = scmp.ne.s32.totalorder %s859_s12, %s855_s11 }
   0xb   : > { %p29_p4 = scmp.ge.s32.totalorder %s1170_s21, 2  ;;  %p76_p5 = scmp.eq.s32.totalorder %s558_s19, 0 }
   0xc   : > { %p994_p6 = por %p70_p2, %p69_p1  ;;  %s85_s24 = ssub.s32 %s875_s16, %s1168_s20 }
   0xd   : > { %s1172_s21 = smov (%p29_p4, %s1170_s21), 0  ;;  %p1002_p7 = por %p76_p5, %p75_p3 }
   0xe   : > { %s90_s26 = sadd.s32 1, %s851_s10  ;;  %s59_s27 = ssub.s32 %s879_s17, %s1172_s21 }
   0xf   : > { %p100_p8 = scmp.ne.s32.totalorder %s851_s10, %s847_s9  ;;  %p60_p9 = scmp.eq.s32.totalorder %s59_s27, 0 }
  0x10   : > { %s87_s28 = sor.u32 %s85_s24, %s59_s27  ;;  %p101_p11 = scmp.eq.s32.totalorder %s558_s19, 15 }
  0x11   : > { %p88_p10 = scmp.eq.s32.totalorder %s87_s28, 0  ;;  %p561_p13 = scmp.ge.s32.totalorder %s883_s18, 16 }
  0x12   : > { %s1012_s29 = scalar_select %p60_p9, %s863_s13, %s62_s22  }
  0x13   : > { %s1015_s30 = scalar_select %p88_p10, %s851_s10, %s90_s26  }
  0x14   : > { %p1017_p12 = por %p101_p11, %p100_p8  ;;  %123 = sbr.rel (%p561_p13) target bundleno = 54 (0x36), region = 16 }
  0x1b   : > { %147 = sbr.rel (!%p994_p6) target bundleno = 54 (0x36), region = 24  ;;  %s148_s4 = sand.u32 (%p994_p6), 1, %s863_s13  }
  0x1c   : > { %s582_s5 = smul.u32 (%p994_p6), 56, %s148_s4  ;;  %s1025_s6 = scalar_lea.sflag (%p994_p6), [#allocation3], %s148_s4 }
  0x1d   : > { %s581_s8 = smul.u32 (%p994_p6), 896, %s879_s17  ;;  %s743_s28 = scalar_lea.hbm (%p994_p6), %s1150_s1, 80000 }
  0x1e   : > { %s152_s7 = scalar_lea.vmem (%p994_p6), [#allocation2], %s582_s5 }
  0x1f   : > { %s165_s11 = sshll.u32 (%p994_p6), %s152_s7, 4  ;;  %s1031_s24 = scalar_lea.hbm (%p994_p6), %s1150_s1, %s581_s8  ;;  %s166_s11 = int_to_ptr.vmem [resolvable:$true] %s165_s11 }
  0x20   : > { %s739_s23 = scalar_lea.hbm (%p994_p6), %s1031_s24, 896  ;;  %p744_p1 = scmp.lt.u32.totalorder (%p994_p6), %s1031_s24, %s1150_s1 }
  0x21   : > { %p740_p0 = scmp.ne.s32.totalorder (%p994_p6), %s1031_s24, %s739_s23  ;;  %p745_p2 = scmp.lt.u32.totalorder (%p994_p6), %s743_s28, %s739_s23 }
  0x22   : > { %p747_p4 = scmp.lt.u32.totalorder %s739_s23, %s1031_s24 }
  0x23   : > { %p746_p3 = por %p745_p2, %p744_p1 }
  0x25   : > { %p748_p5 = por %p747_p4, %p746_p3 }
  0x27   : > { %p749_p6 = pnand %p748_p5, %p740_p0 }
  0x29   : > { %752 = shalt.err (!%p749_p6)
}
  0x2a   : > { %s753_s7 = scalar_lea.vmem %s166_s11, 896  ;;  %s917_s8 = smov [#allocation2]  }
  0x2b   : > { %p754_p8 = scmp.ne.s32.totalorder %s166_s11, %s753_s7  ;;  %s757_s19 = sshll.u32 %s917_s8, 4  ;;  %s758_s19 = int_to_ptr.vmem [resolvable:$false] %s757_s19 }
  0x2c   : > { %s759_s22 = scalar_lea.vmem %s758_s19, 1792  ;;  %p760_p9 = scmp.lt.s32.totalorder %s166_s11, %s758_s19 }
  0x2d   : > { %p761_p10 = scmp.lt.s32.totalorder %s759_s22, %s753_s7 }
  0x2f   : > { %p762_p11 = por %p761_p10, %p760_p9 }
  0x31   : > { %p763_p13 = pnand %p762_p11, %p754_p8 }
  0x33   : > { %766 = shalt.err (!%p763_p13)
}
  0x34   : > { %s918_s26 = smov 128   ;;  %s919_s27 = smov 8  }
  0x35   : > { %171 = dma.hbm_to_vmem [thread:$0]  %s1031_s24, 896, %s166_s11, %s1025_s6, %s918_s26, %s918_s26, %s919_s27  }
  0x36 PF: > { %p567_p0 = scmp.ge.s32.totalorder %s883_s18, 1  ;;  %p173_p1 = scmp.lt.s32.totalorder %s883_s18, 17 }
  0x38   : > { %p174_p2 = pnand %p567_p0, %p173_p1 }
  0x39   : > { %s179_s23 = sand.u32 (!%p174_p2), 1, %s859_s12  }
  0x3a   : > { %177 = sbr.rel (%p174_p2) target bundleno = 144 (0x90), region = 28  ;;  %s180_s4 = scalar_lea.sflag (!%p174_p2), [#allocation3], %s179_s23 }
  0x3b   : > { %s583_s28 = smul.u32 (!%p174_p2), 56, %s179_s23 }
  0x3d   : > { %s183_s5 = scalar_lea.vmem (!%p174_p2), [#allocation2], %s583_s28 }
  0x41   : > { %840 = dma.done.wait (%p1002_p7), %s180_s4, 896  }
  0x42   : > { %842 = vsyncadd (%p1002_p7), %s180_s4, 4294966400  ;;  %s1053_s6 = smul.u32 7, %s871_s15  ;;  %p221_p3 = scmp.lt.s32.totalorder %s867_s14, 7  ;;  %v251_v0 = vld [vmem:[%s183_s5] sm:$0xff]  ;;  %v252_v1 = vld [vmem:[%s183_s5 + $0x8] sm:$0xff] }
  0x43   : > { %s213_s11 = sand.u32 1, %s847_s9   ;;  %v253_v2 = vld [vmem:[%s183_s5 + $0x10] sm:$0xff]  ;;  %v254_v3 = vld [vmem:[%s183_s5 + $0x18] sm:$0xff]  ;;  %v255_v4 = vld [vmem:[%s183_s5 + $0x20] sm:$0xff]  ;;  %s586_s28 = smul.u32 (%p1017_p12), 13, %s867_s14 }
  0x44   : > { %p223_p4 = scmp.lt.s32.totalorder %s1053_s6, 12  ;;  %s584_s19 = smul.u32 56, %s213_s11  ;;  %v256_v5 = vld [vmem:[%s183_s5 + $0x28] sm:$0xff]  ;;  %v257_v6 = vld [vmem:[%s183_s5 + $0x30] sm:$0xff] }
  0x45   : > { %s222_s24 = scalar_select %p221_p3, %s867_s14, 7 }
  0x46   : > { %s224_s7 = scalar_select %p223_p4, %s1053_s6, 12 }
  0x47   : > { %s585_s8 = smul.u32 13, %s222_s24  ;;  %s1063_s9 = scalar_lea.vmem [#allocation4], %s584_s19  }
  0x48   : > { %s280_s23 = ssub.s32 (%p1017_p12), 13, %s1053_s6  ;;  %s286_s4 = sadd.s32 (%p1017_p12), %s586_s28, %s1053_s6 }
  0x49   : > { %s226_s22 = sadd.s32 %s585_s8, %s224_s7  ;;  %p281_p7 = scmp.lt.s32.totalorder (%p1017_p12), %s280_s23, 7 }
  0x4a   : > { %s568_s26 = sshll.u32 %s226_s22, 3  ;;  %s571_s5 = sshll.u32 (%p1017_p12), %s286_s4, 3 }
  0x4b   : > { %s228_s15 = scalar_lea.vmem %s1149_s0, %s568_s26  ;;  %s1083_s8 = scalar_lea.vmem (%p1017_p12), %s1151_s2, %s571_s5  }
  0x4c   : > { %v244_v7 = vld [vmem:[%s228_s15] sm:$0xff]  ;;  %v245_v8 = vld [vmem:[%s228_s15 + $0x8] sm:$0xff]  ;;  %v246_v9 = vld [vmem:[%s228_s15 + $0x10] sm:$0xff]  ;;  %278 = sbr.rel (!%p1017_p12) target bundleno = 144 (0x90), region = 36 }
  0x4d   : > { %v258_v10 = vadd.f32 %v251_v0, %v244_v7  ;;  %v259_v11 = vadd.f32 %v252_v1, %v245_v8  ;;  %v260_v12 = vadd.f32 %v253_v2, %v246_v9  ;;  %v247_v13 = vld [vmem:[%s228_s15 + $0x18] sm:$0xff]  ;;  %v248_v14 = vld [vmem:[%s228_s15 + $0x20] sm:$0xff]  ;;  %v249_v15 = vld [vmem:[%s228_s15 + $0x28] sm:$0xff] }
  0x4e   : > { %v261_v16 = vadd.f32 %v254_v3, %v247_v13  ;;  %v262_v17 = vadd.f32 %v255_v4, %v248_v14  ;;  %v263_v18 = vadd.f32 %v256_v5, %v249_v15  ;;  %v250_v19 = vld [vmem:[%s228_s15 + $0x30] sm:$0xff] }
  0x4f   : > { %265 = vst [vmem:[%s1063_s9] sm:$0xff] %v258_v10  ;;  %266 = vst [vmem:[%s1063_s9 + $0x8] sm:$0xff] %v259_v11  ;;  %v264_v20 = vadd.f32 %v257_v6, %v250_v19 }
  0x50   : > { %267 = vst [vmem:[%s1063_s9 + $0x10] sm:$0xff] %v260_v12  ;;  %268 = vst [vmem:[%s1063_s9 + $0x18] sm:$0xff] %v261_v16 }
  0x51   : > { %269 = vst [vmem:[%s1063_s9 + $0x20] sm:$0xff] %v262_v17  ;;  %270 = vst [vmem:[%s1063_s9 + $0x28] sm:$0xff] %v263_v18 }
  0x52   : > { %271 = vst [vmem:[%s1063_s9 + $0x30] sm:$0xff] %v264_v20 }
  0x53   : > { %s1174_s23 = smov (!%p281_p7, %s280_s23), 7 }
  0x54   : > { %s569_s11 = sshll.u32 %s1174_s23, 7 }
  0x55   : > { %p572_p5 = scmp.eq.s32.totalorder %s569_s11, 0 }
  0x56   : > { %735 = sdivrem.u32 (!%p572_p5), %s1174_s23, 7 }
  0x57   : > { %291 = sbr.rel (%p572_p5) target bundleno = 144 (0x90), region = 40 }
  0x5f   : > { %s1086_s3 = spop.drf %735 }
  0x60   : > { %p573_p12 = scmp.le.s32.totalorder %s1086_s3, 0 }
  0x61   : > { %s1155_s14 = smov (!%p573_p12), %s1083_s8  ;;  %s1156_s6 = smov (!%p573_p12), %s1063_s9 }
  0x62   : > { %494 = sbr.rel (%p573_p12) target bundleno = 115 (0x73), region = 125  ;;  %s1095_s19 = smov (!%p573_p12), 0  }
  0x63   : > { %s1097_s22 = smov (!%p573_p12), 0  }
  0x69 LB: >> { %v367_v21 = vld [vmem:[%s891_s6] sm:$0xff]  ;;  %v369_v22 = vld [vmem:[%s891_s6 + $0x8] sm:$0xff]  ;;  %v371_v23 = vld [vmem:[%s891_s6 + $0x10] sm:$0xff]  ;;  %s381_s26 = sadd.s32 1, %s895_s19  ;;  %s361_s22 = sadd.s32 1, %s899_s22   ;;  %s899_s22 = sphi %s1097_s22, %s361_s22   ;;  %s895_s19 = sphi %s1095_s19, %s1157_s19   ;;  %s891_s6 = sphi %s1156_s6, %s386_s6   ;;  %s887_s14 = sphi %s1155_s14, %s387_s14  }
  0x6a   : >> { %368 = vst [vmem:[%s887_s14] sm:$0xff] %v367_v21  ;;  %370 = vst [vmem:[%s887_s14 + $0x8] sm:$0xff] %v369_v22  ;;  %v373_v24 = vld [vmem:[%s891_s6 + $0x18] sm:$0xff]  ;;  %v375_v25 = vld [vmem:[%s891_s6 + $0x20] sm:$0xff]  ;;  %p382_p6 = scmp.ge.s32.totalorder %s381_s26, %s1086_s3  ;;  %p360_p8 = scmp.ge.s32.totalorder %s361_s22, %s1086_s3 }
  0x6b   : >> { %372 = vst [vmem:[%s887_s14 + $0x10] sm:$0xff] %v371_v23  ;;  %v377_v26 = vld [vmem:[%s891_s6 + $0x28] sm:$0xff]  ;;  %374 = vst [vmem:[%s887_s14 + $0x18] sm:$0xff] %v373_v24  ;;  %v379_v27 = vld [vmem:[%s891_s6 + $0x30] sm:$0xff] }
  0x6c   : >> { %376 = vst [vmem:[%s887_s14 + $0x20] sm:$0xff] %v375_v25  ;;  %378 = vst [vmem:[%s887_s14 + $0x28] sm:$0xff] %v377_v26  ;;  %s1176_s26 = smov (%p382_p6, %s381_s26), 0  ;;  %363 = sbr.rel (!%p360_p8) target bundleno = 105 (0x69), region = 131 }
  0x6d   : >> { %380 = vst [vmem:[%s887_s14 + $0x30] sm:$0xff] %v379_v27  ;;  %s384_s25 = smul.u32 56, %s1176_s26  ;;  %s1157_s19 = smov %s1176_s26 }
  0x6f   : >> { %s386_s6 = scalar_lea.vmem %s1063_s9, %s384_s25 [#allocation4]   ;;  %s387_s14 = scalar_lea.vmem %s1083_s8, %s384_s25  }
  0x73 PF: > { %737 = sdivrem.u32 %s1174_s23, 7 }
  0x74   : > { %s574_s27 = smul.u32 56, %s1086_s3 }
  0x76   : > { %s392_s15 = scalar_lea.vmem %s1063_s9, %s574_s27 [#allocation4]   ;;  %s394_s28 = scalar_lea.vmem %s1083_s8, %s574_s27  }
  0x7c   : > { %s738_s4 = spop.drf %737 }
  0x7d   : > { %p576_p9 = scmp.le.s32.totalorder %s738_s4, 0 }
  0x7e   : > { %s901_s5 = smov (!%p576_p9), %s394_s28   ;;  %s905_s11 = smov (!%p576_p9), %s392_s15  }
  0x7f   : > { %508 = sbr.rel (%p576_p9) target bundleno = 144 (0x90), region = 136  ;;  %s909_s24 = smov (!%p576_p9), 0  }
  0x80   : > { %s913_s7 = smov (!%p576_p9), 0  }
  0x86 LB: >> { %v404_v28 = vld [vmem:[%s907_s11] sm:$0xff]  ;;  %s406_s14 = sadd.s32 1, %s911_s24  ;;  %s398_s7 = sadd.s32 1, %s915_s7   ;;  %s915_s7 = sphi %s913_s7, %s398_s7   ;;  %s911_s24 = sphi %s909_s24, %s910_s24   ;;  %s907_s11 = sphi %s905_s11, %s411_s11   ;;  %s903_s5 = sphi %s901_s5, %s412_s5  }
  0x87   : >> { %405 = vst [vmem:[%s903_s5] sm:$0xff] %v404_v28  ;;  %p407_p10 = scmp.ge.s32.totalorder %s406_s14, %s738_s4  ;;  %p397_p11 = scmp.ge.s32.totalorder %s398_s7, %s738_s4 }
  0x89   : >> { %s1178_s14 = smov (%p407_p10, %s406_s14), 0  ;;  %400 = sbr.rel (!%p397_p11) target bundleno = 134 (0x86), region = 142 }
  0x8a   : >> { %s577_s9 = sshll.u32 %s1178_s14, 3  ;;  %s910_s24 = smov %s1178_s14  }
  0x8b   : >> { %s411_s11 = scalar_lea.vmem %s392_s15, %s577_s9 [#allocation4]   ;;  %s412_s5 = scalar_lea.vmem %s394_s28, %s577_s9  }
  0x90 PF: > { %s15_s18 = sadd.s32 1, %s883_s18   ;;  %s1158_s9 = smov %s851_s10 }
  0x91   : > { %p12_p13 = scmp.ge.s32.totalorder %s15_s18, 18   ;;  %s1159_s10 = smov %s1015_s30 }
  0x92   : > { %s1160_s11 = smov %s859_s12  ;;  %s1161_s12 = smov %s863_s13 }
  0x93   : > { %s1162_s13 = smov %s1012_s29  ;;  %s1163_s14 = smov %s875_s16 }
  0x94   : > { %s1164_s15 = smov %s879_s17  ;;  %s1165_s16 = smov %s1168_s20 }
  0x95   : > { %s1166_s17 = smov %s1172_s21  ;;  %14 = sbr.rel (!%p12_p13) target bundleno = 6 (0x6), region = 153 }
  0x9c   :  { %428 = vsyncpa [#allocation3], 1 }
  0x9d   :  { %430 = vsyncpa [#allocation3 + $0x1], 1 }

</bundles_post_ra>
